<compile_context>
chip_gen: v7x
topology: tpu7x:2x2x1
jax: 0.10.0
libtpu: 0.0.40
codegen_flags: <defaults>
</compile_context>

<pallas_src>
import jax
import jax.numpy as jnp
from jax.experimental import pallas as pl
from jax.experimental.pallas import tpu as pltpu

_LANE = 128
_SUBLANE = 8


def _round_up(v, m):
    return ((v + m - 1) // m) * m


def _resblock_kernel(x_ref, w1_ref, v1_ref, w2_ref, v2_ref, o_ref):
    # x_ref: (tm, H) f32; w1_ref: (H, Hp); v1_ref: (1, Hp);
    # w2_ref: (Hp, H); v2_ref: (1, H); o_ref: (tm, H) f32.
    x = x_ref[...]
    # layer 1: Linear + folded-BN + ReLU  (eval-mode Dropout == identity)
    h = jnp.dot(x.astype(w1_ref.dtype), w1_ref[...],
                preferred_element_type=jnp.float32) + v1_ref[...]
    h = jnp.maximum(h, 0.0)                     # (tm, Hp); padded lanes stay 0
    # layer 2: Linear + folded-BN + ReLU  (output dim already un-padded)
    h = jnp.dot(h.astype(w2_ref.dtype), w2_ref[...],
                preferred_element_type=jnp.float32) + v2_ref[...]
    h = jnp.maximum(h, 0.0)                     # (tm, H)
    # residual add
    o_ref[...] = (h + x).astype(o_ref.dtype)


def prepare_residual_block_params(w1, b1, w2, b2, bn1_params, bn2_params,
                                  eps=1e-5, mxu_dtype=jnp.bfloat16):
    """One-time (init-time) weight preparation.

    w*: (H, H) in PyTorch layout (out, in).  b*: (H,).
    bn*_params: (gamma, beta, running_mean, running_var) scalars
    (BatchNorm1d(1) -> single channel -> scalar affine).
    Folds BN (eval) + Linear bias into the weights plus one per-lane shift,
    transposes, zero-pads to lane-dense sizes and casts to the MXU dtype.
    """
    H = int(w1.shape[0])
    Hp = _round_up(H, _LANE)
    if Hp >= 1280:
        # In the MXU-bound regime the v6e/v7x 256x256 MXU prefers 256-aligned.
        Hp = _round_up(H, 2 * _LANE)

    def fold(w, b, params):
        gamma, beta, mean, var = params
        scale = gamma / jnp.sqrt(var + eps)
        shift = beta - mean * scale
        # scale*(x@W^T + b) + shift == x @ (W^T*scale) + (scale*b + shift)
        wf = (w.T * scale).astype(jnp.float32)          # (H_in, H_out)
        vf = (scale * b + shift).astype(jnp.float32)    # (H,)
        return wf, vf

    w1f, v1 = fold(w1, b1, bn1_params)
    w2f, v2 = fold(w2, b2, bn2_params)

    pad = Hp - H
    # Layer 1 padded on its OUTPUT dim, layer 2 on its INPUT dim; zero pads
    # keep the hidden tile's padded lanes exactly 0 through dot+shift+ReLU.
    w1p = jnp.pad(w1f, ((0, 0), (0, pad))).astype(mxu_dtype)      # (H, Hp)
    w2p = jnp.pad(w2f, ((0, pad), (0, 0))).astype(mxu_dtype)      # (Hp, H)
    v1p = jnp.pad(v1, (0, pad)).reshape(1, Hp).astype(jnp.float32)
    v2p = v2.reshape(1, H).astype(jnp.float32)
    return dict(w1=w1p, v1=v1p, w2=w2p, v2=v2p, H=H, Hp=Hp)


def _tpu_vmem_capacity():
    try:
        return int(pltpu.get_tpu_info().vmem_capacity_bytes)
    except Exception:
        return 64 << 20        # conservative (v7x-sized) default


def _pinned_spec(block_shape, single_buffer):
    """Spec for a resident operand (constant index_map, never re-fetched)."""
    index_map = lambda i: (0, 0)
    if single_buffer and hasattr(pl, "Buffered"):
        return pl.BlockSpec(block_shape, index_map,
                            pipeline_mode=pl.Buffered(1))
    return pl.BlockSpec(block_shape, index_map)


def _plan_tiles(N, H, Hp, wbytes, n_wbuf, max_block_rows, small_vmem, soft_cap):
    def needed(tm):
        io = 2 * 2 * tm * H * 4                  # x + out tiles, double-buffered
        wts = n_wbuf * 2 * H * Hp * wbytes       # w1 (H,Hp) + w2 (Hp,H)
        shf = n_wbuf * (Hp + H) * 4              # shift rows
        return io + wts + shf

    n_tiles = max(1, pl.cdiv(N, max_block_rows))
    tm = min(_round_up(pl.cdiv(N, n_tiles), _SUBLANE), _round_up(N, _SUBLANE))
    # v7x: 2 TensorCores per chip -- make sure the "parallel" batch axis has
    # at least two grid steps whenever N is nontrivial.
    if small_vmem and N >= 64 and pl.cdiv(N, tm) < 2:
        tm = _round_up(pl.cdiv(N, 2), _SUBLANE)
    # Shrink the row tile (never the VMEM limit) if the working set would
    # exceed the per-generation budget.
    while tm > _SUBLANE and needed(tm) > soft_cap:
        tm = _round_up(max(tm // 2, _SUBLANE), _SUBLANE)
    nbytes = needed(tm)
    vmem_limit = int(max(nbytes + nbytes // 4 + (2 << 20), 16 << 20))
    return tm, pl.cdiv(N, tm), vmem_limit


def residual_block_apply(x, params, *, max_block_rows=None):
    """x: (N, 1, H) float32; params: output of prepare_residual_block_params."""
    N, C, H = x.shape
    assert C == 1, "BatchNorm1d(1) implies a single channel"
    assert H == params["H"]
    Hp = params["Hp"]
    w1, v1, w2, v2 = params["w1"], params["v1"], params["w2"], params["v2"]
    wbytes = jnp.dtype(w1.dtype).itemsize

    x2d = x.reshape(N, H)
    if x2d.dtype != jnp.float32:
        x2d = x2d.astype(jnp.float32)

    vmem_cap = _tpu_vmem_capacity()
    small_vmem = vmem_cap <= (96 << 20)          # v7x-class (64 MiB per TC)
    if max_block_rows is None:
        max_block_rows = 512 if small_vmem else 1024
    soft_cap = min((56 << 20) if small_vmem else (100 << 20),
                   max(vmem_cap - (8 << 20), 16 << 20))

    def run(single_buffer_weights):
        n_wbuf = 1 if single_buffer_weights else 2
        tm, grid_n, vmem_limit = _plan_tiles(
            N, H, Hp, wbytes, n_wbuf, max_block_rows, small_vmem, soft_cap)
        call = pl.pallas_call(
            _resblock_kernel,
            out_shape=jax.ShapeDtypeStruct((N, H), jnp.float32),
            grid=(grid_n,),
            in_specs=[
                pl.BlockSpec((tm, H), lambda i: (i, 0)),        # x tile
                _pinned_spec((H, Hp), single_buffer_weights),   # w1 (resident)
                _pinned_spec((1, Hp), single_buffer_weights),   # shift1
                _pinned_spec((Hp, H), single_buffer_weights),   # w2 (resident)
                _pinned_spec((1, H), single_buffer_weights),    # shift2
            ],
            out_specs=pl.BlockSpec((tm, H), lambda i: (i, 0)),
            compiler_params=pltpu.CompilerParams(
                dimension_semantics=("parallel",),
                vmem_limit_bytes=vmem_limit),
        )
        return call(x2d, w1, v1, w2, v2)

    try:
        out2d = run(single_buffer_weights=True)
    except Exception:
        # Fallback for JAX versions where pipeline_mode=pl.Buffered(1) is not
        # supported on the top-level pallas_call pipeline.
        out2d = run(single_buffer_weights=False)

    return out2d.reshape(N, 1, H)


def residual_block(x, w1, b1, w2, b2, bn1_params, bn2_params, eps=1e-5,
                   mxu_dtype=jnp.bfloat16, max_block_rows=None):
    """Convenience one-shot wrapper (prefer prepare_* once + apply per step)."""
    params = prepare_residual_block_params(
        w1, b1, w2, b2, bn1_params, bn2_params, eps=eps, mxu_dtype=mxu_dtype)
    return residual_block_apply(x, params, max_block_rows=max_block_rows)


def _reference(x, w1, b1, w2, b2, bn1_params, bn2_params, eps=1e-5):
    def bn(v, params):
        gamma, beta, mean, var = params
        return (v - mean) / jnp.sqrt(var + eps) * gamma + beta
    residual = x
    h = jnp.einsum("nch,oh->nco", x, w1) + b1
    h = jnp.maximum(bn(h, bn1_params), 0.0)
    h = jnp.einsum("nch,oh->nco", h, w2) + b2
    h = jnp.maximum(bn(h, bn2_params), 0.0)
    return h + residual


if __name__ == "__main__":
    N, H = 8, 32                      # batch=8, hidden_layer=32, channel dim = 1
    key = jax.random.PRNGKey(0)
    kx, kw1, kb1, kw2, kb2, kbn = jax.random.split(key, 6)

    x = jax.random.normal(kx, (N, 1, H), dtype=jnp.float32)
    # deterministic synthetic parameters (not a checkpoint)
    w1 = jax.random.normal(kw1, (H, H), dtype=jnp.float32) * 0.1
    b1 = jax.random.normal(kb1, (H,), dtype=jnp.float32) * 0.1
    w2 = jax.random.normal(kw2, (H, H), dtype=jnp.float32) * 0.1
    b2 = jax.random.normal(kb2, (H,), dtype=jnp.float32) * 0.1
    bnvals = jax.random.normal(kbn, (6,), dtype=jnp.float32) * 0.1
    bn1_params = (jnp.float32(1.0) + bnvals[0], bnvals[1],
                  bnvals[2], jnp.float32(1.0) + jnp.abs(bnvals[3]))
    bn2_params = (jnp.float32(1.0) + bnvals[4], bnvals[5],
                  jnp.float32(0.05), jnp.float32(1.2))

    ref = _reference(x, w1, b1, w2, b2, bn1_params, bn2_params)

    # f32 MXU path -- strict check (weights prepared ONCE, reused per call)
    params_f32 = prepare_residual_block_params(
        w1, b1, w2, b2, bn1_params, bn2_params, mxu_dtype=jnp.float32)
    out_f32 = residual_block_apply(x, params_f32)
    jax.block_until_ready(out_f32)
    assert out_f32.shape == (N, 1, H)
    assert jnp.allclose(out_f32, ref, atol=1e-4, rtol=1e-4), "f32 mismatch vs reference"

    # bf16-MXU path (default perf mode on all generations) -- looser tolerance
    params_bf16 = prepare_residual_block_params(
        w1, b1, w2, b2, bn1_params, bn2_params, mxu_dtype=jnp.bfloat16)
    out_bf16 = residual_block_apply(x, params_bf16)
    jax.block_until_ready(out_bf16)
    assert out_bf16.shape == (N, 1, H)
    assert jnp.allclose(out_bf16, ref, atol=5e-2, rtol=5e-2), "bf16 mismatch vs reference"

    print("KERNEL_OK")
</pallas_src>

<mosaic_0001>
module attributes {stable_mosaic.version = 11 : i64} {
  func.func @_resblock_kernel(%arg0: i32, %arg1: memref<8x32xf32, #tpu.memory_space<vmem>>, %arg2: memref<32x128xf32, #tpu.memory_space<vmem>>, %arg3: memref<1x128xf32, #tpu.memory_space<vmem>>, %arg4: memref<128x32xf32, #tpu.memory_space<vmem>>, %arg5: memref<1x32xf32, #tpu.memory_space<vmem>>, %arg6: memref<8x32xf32, #tpu.memory_space<vmem>>) attributes {dimension_semantics = [#tpu.dimension_semantics<parallel>], iteration_bounds = array<i64: 1>, scalar_prefetch = 0 : i64, scratch_operands = 0 : i64, tpu.core_type = #tpu.core_type<tc>, window_params = [{transform_indices = @transform_0, window_bounds = array<i64: 8, 32>}, {pipeline_mode = #tpu.pipeline_mode<synchronous>, transform_indices = @transform_1, window_bounds = array<i64: 32, 128>}, {pipeline_mode = #tpu.pipeline_mode<synchronous>, transform_indices = @transform_2, window_bounds = array<i64: 1, 128>}, {pipeline_mode = #tpu.pipeline_mode<synchronous>, transform_indices = @transform_3, window_bounds = array<i64: 128, 32>}, {pipeline_mode = #tpu.pipeline_mode<synchronous>, transform_indices = @transform_4, window_bounds = array<i64: 1, 32>}, {transform_indices = @transform_5, window_bounds = array<i64: 8, 32>}]} {
    %c0 = arith.constant 0 : index
    %c0_0 = arith.constant 0 : index
    %0 = vector.load %arg1[%c0, %c0_0] : memref<8x32xf32, #tpu.memory_space<vmem>>, vector<8x32xf32>
    %c0_1 = arith.constant 0 : index
    %c0_2 = arith.constant 0 : index
    %1 = vector.load %arg2[%c0_1, %c0_2] : memref<32x128xf32, #tpu.memory_space<vmem>>, vector<32x128xf32>
    %cst = arith.constant dense<0.000000e+00> : vector<8x128xf32>
    %2 = tpu.matmul %0, %1, %cst {dimension_numbers = #tpu.dot_dimension_numbers<[1], [0], [0], [1], [0, 0, 1, 1], [], []>} : vector<8x32xf32>, vector<32x128xf32>, vector<8x128xf32> -> vector<8x128xf32>
    %c0_3 = arith.constant 0 : index
    %c0_4 = arith.constant 0 : index
    %3 = vector.load %arg3[%c0_3, %c0_4] : memref<1x128xf32, #tpu.memory_space<vmem>>, vector<1x128xf32>
    %4 = vector.broadcast %3 : vector<1x128xf32> to vector<8x128xf32>
    %5 = arith.addf %2, %4 : vector<8x128xf32>
    %cst_5 = arith.constant 0.000000e+00 : f32
    %6 = vector.broadcast %cst_5 : f32 to vector<8x128xf32>
    %7 = arith.maximumf %5, %6 : vector<8x128xf32>
    %c0_6 = arith.constant 0 : index
    %c0_7 = arith.constant 0 : index
    %8 = vector.load %arg4[%c0_6, %c0_7] : memref<128x32xf32, #tpu.memory_space<vmem>>, vector<128x32xf32>
    %cst_8 = arith.constant dense<0.000000e+00> : vector<8x32xf32>
    %9 = tpu.matmul %7, %8, %cst_8 {dimension_numbers = #tpu.dot_dimension_numbers<[1], [0], [0], [1], [0, 0, 1, 1], [], []>} : vector<8x128xf32>, vector<128x32xf32>, vector<8x32xf32> -> vector<8x32xf32>
    %c0_9 = arith.constant 0 : index
    %c0_10 = arith.constant 0 : index
    %10 = vector.load %arg5[%c0_9, %c0_10] : memref<1x32xf32, #tpu.memory_space<vmem>>, vector<1x32xf32>
    %11 = vector.broadcast %10 : vector<1x32xf32> to vector<8x32xf32>
    %12 = arith.addf %9, %11 : vector<8x32xf32>
    %cst_11 = arith.constant 0.000000e+00 : f32
    %13 = vector.broadcast %cst_11 : f32 to vector<8x32xf32>
    %14 = arith.maximumf %12, %13 : vector<8x32xf32>
    %15 = arith.addf %14, %0 : vector<8x32xf32>
    %c0_12 = arith.constant 0 : index
    %c0_13 = arith.constant 0 : index
    %16 = vector.load %arg6[%c0_12, %c0_13] : memref<8x32xf32, #tpu.memory_space<vmem>>, vector<8x32xf32>
    tpu.vector_store %arg6[%c0_12, %c0_13], %15 {strides = array<i32>} : memref<8x32xf32, #tpu.memory_space<vmem>>, vector<8x32xf32>,
    return
  }
  func.func @transform_0(%arg0: i32) -> (i32, i32) {
    %c0_i32 = arith.constant 0 : i32
    %c0_i32_0 = arith.constant 0 : i32
    return %arg0, %c0_i32 : i32, i32
  }
  func.func @transform_1(%arg0: i32) -> (i32, i32) {
    %c0_i32 = arith.constant 0 : i32
    %c0_i32_0 = arith.constant 0 : i32
    %c0_i32_1 = arith.constant 0 : i32
    return %c0_i32, %c0_i32_0 : i32, i32
  }
  func.func @transform_2(%arg0: i32) -> (i32, i32) {
    %c0_i32 = arith.constant 0 : i32
    %c0_i32_0 = arith.constant 0 : i32
    %c0_i32_1 = arith.constant 0 : i32
    return %c0_i32, %c0_i32_0 : i32, i32
  }
  func.func @transform_3(%arg0: i32) -> (i32, i32) {
    %c0_i32 = arith.constant 0 : i32
    %c0_i32_0 = arith.constant 0 : i32
    %c0_i32_1 = arith.constant 0 : i32
    return %c0_i32, %c0_i32_0 : i32, i32
  }
  func.func @transform_4(%arg0: i32) -> (i32, i32) {
    %c0_i32 = arith.constant 0 : i32
    %c0_i32_0 = arith.constant 0 : i32
    %c0_i32_1 = arith.constant 0 : i32
    return %c0_i32, %c0_i32_0 : i32, i32
  }
  func.func @transform_5(%arg0: i32) -> (i32, i32) {
    %c0_i32 = arith.constant 0 : i32
    %c0_i32_0 = arith.constant 0 : i32
    return %arg0, %c0_i32 : i32, i32
  }
}

module attributes {stable_mosaic.version = 11 : i64} {
  func.func @_resblock_kernel(%arg0: i32, %arg1: memref<8x32xf32, #tpu.memory_space<vmem>>, %arg2: memref<32x128xf32, #tpu.memory_space<vmem>>, %arg3: memref<1x128xf32, #tpu.memory_space<vmem>>, %arg4: memref<128x32xf32, #tpu.memory_space<vmem>>, %arg5: memref<1x32xf32, #tpu.memory_space<vmem>>, %arg6: memref<8x32xf32, #tpu.memory_space<vmem>>) attributes {dimension_semantics = [#tpu.dimension_semantics<parallel>], iteration_bounds = array<i64: 1>, scalar_prefetch = 0 : i64, scratch_operands = 0 : i64, tpu.core_type = #tpu.core_type<tc>, window_params = [{transform_indices = @transform_0, window_bounds = array<i64: 8, 32>}, {pipeline_mode = #tpu.pipeline_mode<synchronous>, transform_indices = @transform_1, window_bounds = array<i64: 32, 128>}, {pipeline_mode = #tpu.pipeline_mode<synchronous>, transform_indices = @transform_2, window_bounds = array<i64: 1, 128>}, {pipeline_mode = #tpu.pipeline_mode<synchronous>, transform_indices = @transform_3, window_bounds = array<i64: 128, 32>}, {pipeline_mode = #tpu.pipeline_mode<synchronous>, transform_indices = @transform_4, window_bounds = array<i64: 1, 32>}, {transform_indices = @transform_5, window_bounds = array<i64: 8, 32>}]} {
    %c0 = arith.constant 0 : index
    %c0_0 = arith.constant 0 : index
    %0 = vector.load %arg1[%c0, %c0_0] : memref<8x32xf32, #tpu.memory_space<vmem>>, vector<8x32xf32>
    %c0_1 = arith.constant 0 : index
    %c0_2 = arith.constant 0 : index
    %1 = vector.load %arg2[%c0_1, %c0_2] : memref<32x128xf32, #tpu.memory_space<vmem>>, vector<32x128xf32>
    %cst = arith.constant dense<0.000000e+00> : vector<8x128xf32>
    %2 = tpu.matmul %0, %1, %cst {dimension_numbers = #tpu.dot_dimension_numbers<[1], [0], [0], [1], [0, 0, 1, 1], [], []>} : vector<8x32xf32>, vector<32x128xf32>, vector<8x128xf32> -> vector<8x128xf32>
    %c0_3 = arith.constant 0 : index
    %c0_4 = arith.constant 0 : index
    %3 = vector.load %arg3[%c0_3, %c0_4] : memref<1x128xf32, #tpu.memory_space<vmem>>, vector<1x128xf32>
    %4 = vector.broadcast %3 : vector<1x128xf32> to vector<8x128xf32>
    %5 = arith.addf %2, %4 : vector<8x128xf32>
    %cst_5 = arith.constant 0.000000e+00 : f32
    %6 = vector.broadcast %cst_5 : f32 to vector<8x128xf32>
    %7 = arith.maximumf %5, %6 : vector<8x128xf32>
    %c0_6 = arith.constant 0 : index
    %c0_7 = arith.constant 0 : index
    %8 = vector.load %arg4[%c0_6, %c0_7] : memref<128x32xf32, #tpu.memory_space<vmem>>, vector<128x32xf32>
    %cst_8 = arith.constant dense<0.000000e+00> : vector<8x32xf32>
    %9 = tpu.matmul %7, %8, %cst_8 {dimension_numbers = #tpu.dot_dimension_numbers<[1], [0], [0], [1], [0, 0, 1, 1], [], []>} : vector<8x128xf32>, vector<128x32xf32>, vector<8x32xf32> -> vector<8x32xf32>
    %c0_9 = arith.constant 0 : index
    %c0_10 = arith.constant 0 : index
    %10 = vector.load %arg5[%c0_9, %c0_10] : memref<1x32xf32, #tpu.memory_space<vmem>>, vector<1x32xf32>
    %11 = vector.broadcast %10 : vector<1x32xf32> to vector<8x32xf32>
    %12 = arith.addf %9, %11 : vector<8x32xf32>
    %cst_11 = arith.constant 0.000000e+00 : f32
    %13 = vector.broadcast %cst_11 : f32 to vector<8x32xf32>
    %14 = arith.maximumf %12, %13 : vector<8x32xf32>
    %15 = arith.addf %14, %0 : vector<8x32xf32>
    %c0_12 = arith.constant 0 : index
    %c0_13 = arith.constant 0 : index
    %16 = vector.load %arg6[%c0_12, %c0_13] : memref<8x32xf32, #tpu.memory_space<vmem>>, vector<8x32xf32>
    tpu.vector_store %arg6[%c0_12, %c0_13], %15 {strides = array<i32>} : memref<8x32xf32, #tpu.memory_space<vmem>>, vector<8x32xf32>,
    return
  }
  func.func @transform_0(%arg0: i32) -> (i32, i32) {
    %c0_i32 = arith.constant 0 : i32
    %c0_i32_0 = arith.constant 0 : i32
    return %arg0, %c0_i32 : i32, i32
  }
  func.func @transform_1(%arg0: i32) -> (i32, i32) {
    %c0_i32 = arith.constant 0 : i32
    %c0_i32_0 = arith.constant 0 : i32
    %c0_i32_1 = arith.constant 0 : i32
    return %c0_i32, %c0_i32_0 : i32, i32
  }
  func.func @transform_2(%arg0: i32) -> (i32, i32) {
    %c0_i32 = arith.constant 0 : i32
    %c0_i32_0 = arith.constant 0 : i32
    %c0_i32_1 = arith.constant 0 : i32
    return %c0_i32, %c0_i32_0 : i32, i32
  }
  func.func @transform_3(%arg0: i32) -> (i32, i32) {
    %c0_i32 = arith.constant 0 : i32
    %c0_i32_0 = arith.constant 0 : i32
    %c0_i32_1 = arith.constant 0 : i32
    return %c0_i32, %c0_i32_0 : i32, i32
  }
  func.func @transform_4(%arg0: i32) -> (i32, i32) {
    %c0_i32 = arith.constant 0 : i32
    %c0_i32_0 = arith.constant 0 : i32
    %c0_i32_1 = arith.constant 0 : i32
    return %c0_i32, %c0_i32_0 : i32, i32
  }
  func.func @transform_5(%arg0: i32) -> (i32, i32) {
    %c0_i32 = arith.constant 0 : i32
    %c0_i32_0 = arith.constant 0 : i32
    return %arg0, %c0_i32 : i32, i32
  }
}

</mosaic_0001>

<bundles_post_ra>
// kernel: tpu_custom_call.1
= control target key start
LH: loop header
LB: loop body
LE: loop exit
PB: predicated region body
PF: predicated region fallthrough
CT: control target
= control target key end

     0   :  { %v347_v3 = vmov 0.0|0.0   ;;  %vm348_vm0 = vmmov 0   ;;  %v349_v6 = vmov 0.0   ;;  %s464_s0 = inlined_call_operand.vmem [shape: f32[8,32], index: 0, kind: input, shape index: {}]   ;;  %s465_s1 = inlined_call_operand.vmem [shape: f32[32,128], index: 1, kind: input, shape index: {}]   ;;  %s466_s2 = inlined_call_operand.vmem [shape: f32[1,128], index: 2, kind: input, shape index: {}]   ;;  %s467_s3 = inlined_call_operand.vmem [shape: f32[128,32], index: 3, kind: input, shape index: {}]   ;;  %s468_s4 = inlined_call_operand.vmem [shape: f32[1,32], index: 4, kind: input, shape index: {}]   ;;  %s469_s5 = inlined_call_operand.hbm [shape: f32[8,32], index: 5, kind: output, shape index: {}]  }
   0x1   :  { %v22_v0 = vld [vmem:[%s465_s1] sm:$0xff]  ;;  %v23_v1 = vld [vmem:[%s465_s1 + $0x8] sm:$0xff]  ;;  %v24_v2 = vld [vmem:[%s465_s1 + $0x10] sm:$0xff]  ;;  %289 = vmatprep.subr.bf16.mxu0 %v347_v3  ;;  %251 = vmatprep.mubr.msk.f32.mxu0 %vm348_vm0, %v349_v6 }
   0x2   :  { %v290_v4 = vpack.c.bf16 %v23_v1, %v22_v0  ;;  %v25_v5 = vld [vmem:[%s465_s1 + $0x18] sm:$0xff]  ;;  %v108_v7 = vld [vmem:[%s467_s3] sm:$0xff]  ;;  %295 = vmatprep.subr.bf16.mxu1 %v347_v3  ;;  %v109_v8 = vld [vmem:[%s467_s3 + $0x8] sm:$0xff]  ;;  %286 = vmatprep.mubr.msk.f32.mxu1 %vm348_vm0, %v349_v6 }
   0x3   :  { %v110_v9 = vld [vmem:[%s467_s3 + $0x10] sm:$0xff]  ;;  %v111_v10 = vld [vmem:[%s467_s3 + $0x18] sm:$0xff]  ;;  %v293_v11 = vpack.c.bf16 %v25_v5, %v24_v2  ;;  %v296_v12 = vpack.c.bf16 %v109_v8, %v108_v7  ;;  %v112_v14 = vld [vmem:[%s467_s3 + $0x20] sm:$0xff] }
   0x4   :  { %291 = vmatpush3.bf16.msra.mxu0 %v290_v4  ;;  %v299_v13 = vpack.c.bf16 %v111_v10, %v110_v9  ;;  %v113_v15 = vld [vmem:[%s467_s3 + $0x28] sm:$0xff] }
   0x5   :  { %292 = vmatprep.subr.bf16.mxu0 %v347_v3  ;;  %297 = vmatpush3.bf16.msra.mxu1 %v296_v12 }
   0x6   :  { %298 = vmatprep.subr.bf16.mxu1 %v347_v3 }
   0x7   :  { %10 = vsyncpa [#allocation3], 0  ;;  %v21_v16 = vld [vmem:[%s464_s0] sm:$0xff]  ;;  %vm33_vm1 = vcmask 261120   ;;  %v302_v17 = vpack.c.bf16 %v113_v15, %v112_v14  ;;  %v114_v18 = vld [vmem:[%s467_s3 + $0x30] sm:$0xff]  ;;  %s350_s11 = smov [#allocation2]  }
   0x8   :  { %294 = vmatpush3.bf16.msra.mxu0 %v293_v11  ;;  %v115_v19 = vld [vmem:[%s467_s3 + $0x38] sm:$0xff]  ;;  %v116_v21 = vld [vmem:[%s467_s3 + $0x40] sm:$0xff]  ;;  %v117_v22 = vld [vmem:[%s467_s3 + $0x48] sm:$0xff] }
   0x9   :  { %300 = vmatpush3.bf16.msra.mxu1 %v299_v13  ;;  %v305_v20 = vpack.c.bf16 %v115_v19, %v114_v18  ;;  %v308_v23 = vpack.c.bf16 %v117_v22, %v116_v21  ;;  %v118_v24 = vld [vmem:[%s467_s3 + $0x50] sm:$0xff]  ;;  %v119_v25 = vld [vmem:[%s467_s3 + $0x58] sm:$0xff]  ;;  %v120_v27 = vld [vmem:[%s467_s3 + $0x60] sm:$0xff] }
   0xa   :  { %301 = vmatprep.subr.bf16.mxu1 %v347_v3  ;;  %v311_v26 = vpack.c.bf16 %v119_v25, %v118_v24  ;;  %v121_v28 = vld [vmem:[%s467_s3 + $0x68] sm:$0xff]  ;;  %v122_v30 = vld [vmem:[%s467_s3 + $0x70] sm:$0xff]  ;;  %v123_v31 = vld [vmem:[%s467_s3 + $0x78] sm:$0xff]  ;;  %s210_s3 = sshll.u32 %s350_s11, 4  ;;  %s211_s3 = int_to_ptr.vmem [resolvable:$true] %s210_s3 }
   0xb   :  { %252 = vmatmul.mubr.msk.f32.vlgmr.msra.gmra.mrb[0].mxu0 %vm33_vm1, %v21_v16  ;;  %v314_v29 = vpack.c.bf16 %v121_v28, %v120_v27  ;;  %v317_v32 = vpack.c.bf16 %v123_v31, %v122_v30  ;;  %v218_v33 = vld [vmem:[%s466_s2] ss:$0 sm:$0xff]  ;;  %s323_s2 = scalar_lea.vmem %s211_s3, 128  ;;  %p328_p1 = scmp.lt.s32.totalorder %s211_s3, %s211_s3 }
   0xc   :  { %v220_v38 = vld [vmem:[%s468_s4] ss:$0 sm:$0xff]  ;;  %p324_p0 = scmp.ne.s32.totalorder %s211_s3, %s323_s2  ;;  %p329_p2 = scmp.lt.s32.totalorder %s323_s2, %s323_s2 }
   0xd   :  { %303 = vmatpush3.bf16.msra.mxu1 %v302_v17 }
   0xe   :  { %304 = vmatprep.subr.bf16.mxu1 %v347_v3  ;;  %p330_p3 = por %p329_p2, %p328_p1 }
  0x10   :  { %p331_p4 = pnand %p330_p3, %p324_p0 }
  0x11   :  { %306 = vmatpush3.bf16.msra.mxu1 %v305_v20 }
  0x12   :  { %307 = vmatprep.subr.bf16.mxu1 %v347_v3 }
  0x15   :  { %309 = vmatpush3.bf16.msra.mxu1 %v308_v23 }
  0x16   :  { %310 = vmatprep.subr.bf16.mxu1 %v347_v3 }
  0x19   :  { %312 = vmatpush3.bf16.msra.mxu1 %v311_v26 }
  0x1a   :  { %313 = vmatprep.subr.bf16.mxu1 %v347_v3 }
  0x1d   :  { %315 = vmatpush3.bf16.msra.mxu1 %v314_v29 }
  0x1e   :  { %316 = vmatprep.subr.bf16.mxu1 %v347_v3 }
  0x21   :  { %318 = vmatpush3.bf16.msra.mxu1 %v317_v32 }
  0xde   :  { %v103_v34 = vpop.f32.mrb[0].mxu0 }
  0xdf   :  { %v104_v35 = vadd.f32 %v218_v33, %v103_v34  ;;  %v253_v36 = vpop.f32.mrb[1].mxu0 }
  0xe1   :  { %v107_v37 = vmax.f32 %v104_v35, 0.0 }
  0xe3   :  { %287 = vmatmul.mubr.f32.vlgmr.msra.gmra.mrb[0].mxu1 %v107_v37 }
 0x1b6   :  { %v197_v39 = vpop.f32.mrb[0].mxu1 }
 0x1b7   :  { %v198_v40 = vadd.f32 %v220_v38, %v197_v39  ;;  %v288_v41 = vpop.f32.mrb[1].mxu1 }
 0x1b9   :  { %v201_v42 = vmax.f32 %v198_v40, 0.0 }
 0x1bb   :  { %v202_v43 = vadd.f32 %v201_v42, %v21_v16 }
 0x1bd   :  { %203 = vst.msk [vmem:[#allocation2] sm:$0xff] %vm33_vm1, %v202_v43 }
 0x1be   :  { %334 = shalt.err (!%p331_p4)
}
 0x1bf   :  { %s335_s4 = scalar_lea.hbm %s469_s5, 128 }
 0x1c0   :  { %p336_p5 = scmp.ne.s32.totalorder %s469_s5, %s335_s4  ;;  %p339_p6 = scmp.lt.u32.totalorder %s335_s4, %s469_s5 }
 0x1c2   :  { %p341_p7 = pnand %p339_p6, %p336_p5 }
 0x1c4   :  { %344 = shalt.err (!%p341_p7)
}
 0x1c5   :  { %213 = dma.vmem_to_hbm [thread:$0]  %s211_s3, 128, %s469_s5, [#allocation3]  }
 0x1c6   :  { %345 = dma.done.wait [#allocation3], 128  }
 0x1c7   :  { %346 = vsyncadd [#allocation3], 4294967168 }
 0x1c8   :  { %217 = vsyncpa [#allocation3], 1 }

// kernel: tpu_custom_call.1
= control target key start
LH: loop header
LB: loop body
LE: loop exit
PB: predicated region body
PF: predicated region fallthrough
CT: control target
= control target key end

     0   :  { %v347_v3 = vmov 0.0|0.0   ;;  %vm348_vm0 = vmmov 0   ;;  %v349_v6 = vmov 0.0   ;;  %s464_s0 = inlined_call_operand.vmem [shape: f32[8,32], index: 0, kind: input, shape index: {}]   ;;  %s465_s1 = inlined_call_operand.vmem [shape: f32[32,128], index: 1, kind: input, shape index: {}]   ;;  %s466_s2 = inlined_call_operand.vmem [shape: f32[1,128], index: 2, kind: input, shape index: {}]   ;;  %s467_s3 = inlined_call_operand.vmem [shape: f32[128,32], index: 3, kind: input, shape index: {}]   ;;  %s468_s4 = inlined_call_operand.vmem [shape: f32[1,32], index: 4, kind: input, shape index: {}]   ;;  %s469_s5 = inlined_call_operand.hbm [shape: f32[8,32], index: 5, kind: output, shape index: {}]  }
   0x1   :  { %v22_v0 = vld [vmem:[%s465_s1] sm:$0xff]  ;;  %v23_v1 = vld [vmem:[%s465_s1 + $0x8] sm:$0xff]  ;;  %v24_v2 = vld [vmem:[%s465_s1 + $0x10] sm:$0xff]  ;;  %289 = vmatprep.subr.bf16.mxu0 %v347_v3  ;;  %251 = vmatprep.mubr.msk.f32.mxu0 %vm348_vm0, %v349_v6 }
   0x2   :  { %v290_v4 = vpack.c.bf16 %v23_v1, %v22_v0  ;;  %v25_v5 = vld [vmem:[%s465_s1 + $0x18] sm:$0xff]  ;;  %v108_v7 = vld [vmem:[%s467_s3] sm:$0xff]  ;;  %295 = vmatprep.subr.bf16.mxu1 %v347_v3  ;;  %v109_v8 = vld [vmem:[%s467_s3 + $0x8] sm:$0xff]  ;;  %286 = vmatprep.mubr.msk.f32.mxu1 %vm348_vm0, %v349_v6 }
   0x3   :  { %v110_v9 = vld [vmem:[%s467_s3 + $0x10] sm:$0xff]  ;;  %v111_v10 = vld [vmem:[%s467_s3 + $0x18] sm:$0xff]  ;;  %v293_v11 = vpack.c.bf16 %v25_v5, %v24_v2  ;;  %v296_v12 = vpack.c.bf16 %v109_v8, %v108_v7  ;;  %v112_v14 = vld [vmem:[%s467_s3 + $0x20] sm:$0xff] }
   0x4   :  { %291 = vmatpush3.bf16.msra.mxu0 %v290_v4  ;;  %v299_v13 = vpack.c.bf16 %v111_v10, %v110_v9  ;;  %v113_v15 = vld [vmem:[%s467_s3 + $0x28] sm:$0xff] }
   0x5   :  { %292 = vmatprep.subr.bf16.mxu0 %v347_v3  ;;  %297 = vmatpush3.bf16.msra.mxu1 %v296_v12 }
   0x6   :  { %298 = vmatprep.subr.bf16.mxu1 %v347_v3 }
   0x7   :  { %10 = vsyncpa [#allocation3], 0  ;;  %v21_v16 = vld [vmem:[%s464_s0] sm:$0xff]  ;;  %vm33_vm1 = vcmask 261120   ;;  %v302_v17 = vpack.c.bf16 %v113_v15, %v112_v14  ;;  %v114_v18 = vld [vmem:[%s467_s3 + $0x30] sm:$0xff]  ;;  %s350_s11 = smov [#allocation2]  }
   0x8   :  { %294 = vmatpush3.bf16.msra.mxu0 %v293_v11  ;;  %v115_v19 = vld [vmem:[%s467_s3 + $0x38] sm:$0xff]  ;;  %v116_v21 = vld [vmem:[%s467_s3 + $0x40] sm:$0xff]  ;;  %v117_v22 = vld [vmem:[%s467_s3 + $0x48] sm:$0xff] }
   0x9   :  { %300 = vmatpush3.bf16.msra.mxu1 %v299_v13  ;;  %v305_v20 = vpack.c.bf16 %v115_v19, %v114_v18  ;;  %v308_v23 = vpack.c.bf16 %v117_v22, %v116_v21  ;;  %v118_v24 = vld [vmem:[%s467_s3 + $0x50] sm:$0xff]  ;;  %v119_v25 = vld [vmem:[%s467_s3 + $0x58] sm:$0xff]  ;;  %v120_v27 = vld [vmem:[%s467_s3 + $0x60] sm:$0xff] }
   0xa   :  { %301 = vmatprep.subr.bf16.mxu1 %v347_v3  ;;  %v311_v26 = vpack.c.bf16 %v119_v25, %v118_v24  ;;  %v121_v28 = vld [vmem:[%s467_s3 + $0x68] sm:$0xff]  ;;  %v122_v30 = vld [vmem:[%s467_s3 + $0x70] sm:$0xff]  ;;  %v123_v31 = vld [vmem:[%s467_s3 + $0x78] sm:$0xff]  ;;  %s210_s3 = sshll.u32 %s350_s11, 4  ;;  %s211_s3 = int_to_ptr.vmem [resolvable:$true] %s210_s3 }
   0xb   :  { %252 = vmatmul.mubr.msk.f32.vlgmr.msra.gmra.mrb[0].mxu0 %vm33_vm1, %v21_v16  ;;  %v314_v29 = vpack.c.bf16 %v121_v28, %v120_v27  ;;  %v317_v32 = vpack.c.bf16 %v123_v31, %v122_v30  ;;  %v218_v33 = vld [vmem:[%s466_s2] ss:$0 sm:$0xff]  ;;  %s323_s2 = scalar_lea.vmem %s211_s3, 128  ;;  %p328_p1 = scmp.lt.s32.totalorder %s211_s3, %s211_s3 }
   0xc   :  { %v220_v38 = vld [vmem:[%s468_s4] ss:$0 sm:$0xff]  ;;  %p324_p0 = scmp.ne.s32.totalorder %s211_s3, %s323_s2  ;;  %p329_p2 = scmp.lt.s32.totalorder %s323_s2, %s323_s2 }
   0xd   :  { %303 = vmatpush3.bf16.msra.mxu1 %v302_v17 }
   0xe   :  { %304 = vmatprep.subr.bf16.mxu1 %v347_v3  ;;  %p330_p3 = por %p329_p2, %p328_p1 }
  0x10   :  { %p331_p4 = pnand %p330_p3, %p324_p0 }
  0x11   :  { %306 = vmatpush3.bf16.msra.mxu1 %v305_v20 }
  0x12   :  { %307 = vmatprep.subr.bf16.mxu1 %v347_v3 }
  0x15   :  { %309 = vmatpush3.bf16.msra.mxu1 %v308_v23 }
  0x16   :  { %310 = vmatprep.subr.bf16.mxu1 %v347_v3 }
  0x19   :  { %312 = vmatpush3.bf16.msra.mxu1 %v311_v26 }
  0x1a   :  { %313 = vmatprep.subr.bf16.mxu1 %v347_v3 }
  0x1d   :  { %315 = vmatpush3.bf16.msra.mxu1 %v314_v29 }
  0x1e   :  { %316 = vmatprep.subr.bf16.mxu1 %v347_v3 }
  0x21   :  { %318 = vmatpush3.bf16.msra.mxu1 %v317_v32 }
  0xde   :  { %v103_v34 = vpop.f32.mrb[0].mxu0 }
  0xdf   :  { %v104_v35 = vadd.f32 %v218_v33, %v103_v34  ;;  %v253_v36 = vpop.f32.mrb[1].mxu0 }
  0xe1   :  { %v107_v37 = vmax.f32 %v104_v35, 0.0 }
  0xe3   :  { %287 = vmatmul.mubr.f32.vlgmr.msra.gmra.mrb[0].mxu1 %v107_v37 }
 0x1b6   :  { %v197_v39 = vpop.f32.mrb[0].mxu1 }
 0x1b7   :  { %v198_v40 = vadd.f32 %v220_v38, %v197_v39  ;;  %v288_v41 = vpop.f32.mrb[1].mxu1 }
 0x1b9   :  { %v201_v42 = vmax.f32 %v198_v40, 0.0 }
 0x1bb   :  { %v202_v43 = vadd.f32 %v201_v42, %v21_v16 }
 0x1bd   :  { %203 = vst.msk [vmem:[#allocation2] sm:$0xff] %vm33_vm1, %v202_v43 }
 0x1be   :  { %334 = shalt.err (!%p331_p4)
}
 0x1bf   :  { %s335_s4 = scalar_lea.hbm %s469_s5, 128 }
 0x1c0   :  { %p336_p5 = scmp.ne.s32.totalorder %s469_s5, %s335_s4  ;;  %p339_p6 = scmp.lt.u32.totalorder %s335_s4, %s469_s5 }
 0x1c2   :  { %p341_p7 = pnand %p339_p6, %p336_p5 }
 0x1c4   :  { %344 = shalt.err (!%p341_p7)
}
 0x1c5   :  { %213 = dma.vmem_to_hbm [thread:$0]  %s211_s3, 128, %s469_s5, [#allocation3]  }
 0x1c6   :  { %345 = dma.done.wait [#allocation3], 128  }
 0x1c7   :  { %346 = vsyncadd [#allocation3], 4294967168 }
 0x1c8   :  { %217 = vsyncpa [#allocation3], 1 }

</bundles_post_ra>
